<compile_context>
chip_gen: v5e
topology: v5e:2x2
jax: 0.10.0
libtpu: 0.0.40
codegen_flags: <defaults>
</compile_context>

<pallas_src>
import jax
import jax.numpy as jnp
import numpy as np
from jax import lax
from jax.experimental import pallas as pl
from jax.experimental.pallas import tpu as pltpu


def cnn1d_kernel(ph_ref,    # (8*C, B, 16)  packed conv phases (VMEM)
                 wv_ref,    # (8*C, 1, 16)  conv weights, lane-broadcast (VMEM)
                 sb_ref,    # (2,)          [conv bias, out bias] (SMEM)
                 w2t_ref,   # (14, dnn)     dnn2 weight^T (VMEM)
                 b2_ref,    # (1, dnn)      dnn2 bias (VMEM)
                 w3r_ref,   # (1, dnn)      out weight row (VMEM)
                 o_ref):    # (B, 1)
    P = ph_ref[...]                     # (8C, B, 16)
    W = wv_ref[...]                     # (8C, 1, 16) -> sublane-broadcast over B
    prod = P * W                        # (8C, B, 16)
    nck = P.shape[0] // 2               # 4*C  (even group / odd group)

    # Conv1d(C -> 1, kernel=4, stride=2) as even/odd output phases.
    # Even rows already aligned; odd rows were pre-shifted in the wrapper, so the
    # whole channel+tap reduction is a leading-axis sum (no scalar loop).
    acc_e = jnp.sum(prod[:nck], axis=0)   # (B, 16), lane 15 is padding junk
    acc_o = jnp.sum(prod[nck:], axis=0)   # (B, 16), lane 15 is padding junk

    bc = sb_ref[0]
    he = jnp.maximum(acc_e + bc, 0.0)     # ReLU, even conv outputs
    ho = jnp.maximum(acc_o + bc, 0.0)     # ReLU, odd conv outputs

    # MaxPool1d(kernel=4, stride=2): pool[t] = max(h[2t], h[2t+1], h[2t+2], h[2t+3])
    pm = jnp.maximum(he, ho)                         # (B, 16); lanes 0..14 valid
    pool = jnp.maximum(pm[:, 0:14], pm[:, 1:15])     # (B, 14) == Flatten (num_filters=1)

    # dnn2: Linear(14 -> dnn) + ReLU   (DEFAULT matmul precision, f32 accumulate)
    z = jnp.dot(pool, w2t_ref[...], preferred_element_type=jnp.float32) + b2_ref[...]
    a = jnp.maximum(z, 0.0)                          # act2 = ReLU

    # dropout2 has p=0.0 -> identity (nothing to do).

    # out: Linear(dnn -> 1), N=1 -> VPU multiply + lane reduce (skip the MXU).
    y = jnp.sum(a * w3r_ref[...], axis=-1, keepdims=True) + sb_ref[1]
    o_ref[...] = y                                   # no output activation


def cnn1d_forward(x, params):
    wc, bc, w2, b2, w3, b3 = (params[k] for k in ("wc", "bc", "w2", "b2", "w3", "b3"))
    B, C, L = x.shape
    assert L == 62, "dnn2.in_features=14 implies conv input length 62"
    assert wc.shape[0] == 1, "num_filters=1"
    dnn = w2.shape[0]

    # --- layout glue (plain JAX): stride-4 phase split + shift + pack (1 DMA) ---
    p0 = x[:, :, 0::4]                                          # (B, C, 16)
    p1 = x[:, :, 1::4]                                          # (B, C, 16)
    p2 = jnp.pad(x[:, :, 2::4], ((0, 0), (0, 0), (0, 1)))       # (B, C, 16)
    p3 = jnp.pad(x[:, :, 3::4], ((0, 0), (0, 0), (0, 1)))       # (B, C, 16)
    p0s = jnp.pad(p0[:, :, 1:], ((0, 0), (0, 0), (0, 1)))       # p0 shifted by +1
    p1s = jnp.pad(p1[:, :, 1:], ((0, 0), (0, 0), (0, 1)))       # p1 shifted by +1

    # even conv outputs use [p0,p1,p2,p3]; odd use [p2,p3,p0+1,p1+1] -- same weights.
    even = jnp.stack([p0, p1, p2, p3], axis=0)                  # (4, B, C, 16)
    odd = jnp.stack([p2, p3, p0s, p1s], axis=0)                 # (4, B, C, 16)
    ph = jnp.concatenate([even, odd], axis=0)                   # (8, B, C, 16)
    ph = jnp.transpose(ph, (0, 2, 1, 3)).reshape(8 * C, B, 16)  # (8C, B, 16), B on sublanes

    wk = wc.reshape(C, 4)                                       # w[c, k] (single filter)
    wrow = wk.T.reshape(4 * C)                                  # [k*C + c] = w[c, k]
    wrow = jnp.concatenate([wrow, wrow])                        # (8C,) same for even/odd
    wv = jnp.broadcast_to(wrow[:, None, None], (8 * C, 1, 16))  # (8C, 1, 16)

    sb = jnp.concatenate([bc, b3]).astype(jnp.float32)          # (2,) [conv bias, out bias]
    w2t = w2.T                                                  # (14, dnn)
    b2r = b2.reshape(1, dnn)                                    # (1, dnn)
    w3r = w3.reshape(1, dnn)                                    # (1, dnn)

    return pl.pallas_call(
        cnn1d_kernel,
        out_shape=jax.ShapeDtypeStruct((B, 1), jnp.float32),
        grid=(1,),
        in_specs=[
            pl.BlockSpec((8 * C, B, 16), lambda i: (0, 0, 0)),
            pl.BlockSpec((8 * C, 1, 16), lambda i: (0, 0, 0)),
            pl.BlockSpec(memory_space=pltpu.MemorySpace.SMEM),   # [conv bias, out bias]
            pl.BlockSpec((14, dnn), lambda i: (0, 0)),
            pl.BlockSpec((1, dnn), lambda i: (0, 0)),
            pl.BlockSpec((1, dnn), lambda i: (0, 0)),
        ],
        out_specs=pl.BlockSpec((B, 1), lambda i: (0, 0)),
        # TODO(synk): for large B, grid over the batch axis with
        # dimension_semantics=("parallel",) to use both TensorCores on v7x.
        compiler_params=pltpu.CompilerParams(dimension_semantics=("arbitrary",)),
    )(ph, wv, sb, w2t, b2r, w3r)


def cnn1d_reference(x, params):
    """Pure-JAX reference mirroring the PyTorch forward (eval mode)."""
    wc, bc, w2, b2, w3, b3 = (params[k] for k in ("wc", "bc", "w2", "b2", "w3", "b3"))
    h = lax.conv_general_dilated(x, wc, window_strides=(2,), padding="VALID",
                                 dimension_numbers=("NCH", "OIH", "NCH"),
                                 precision=lax.Precision.HIGHEST)
    h = h + bc.reshape(1, -1, 1)
    h = jnp.maximum(h, 0.0)
    h = lax.reduce_window(h, -jnp.inf, lax.max, (1, 1, 4), (1, 1, 2), "VALID")
    h = h.reshape(h.shape[0], -1)
    h = jnp.maximum(jnp.dot(h, w2.T, precision=lax.Precision.HIGHEST) + b2, 0.0)
    y = jnp.dot(h, w3.T, precision=lax.Precision.HIGHEST) + b3   # no output activation
    return y


def init_params(key, in_channels=4, kernel_size=4, dnn_size=1024, num_filters=1):
    ks = jax.random.split(key, 6)

    def unif(k, shape, fan_in):
        bound = 1.0 / np.sqrt(fan_in)
        return jax.random.uniform(k, shape, jnp.float32, -bound, bound)

    fan_c = in_channels * kernel_size
    return dict(
        wc=unif(ks[0], (num_filters, in_channels, kernel_size), fan_c),
        bc=unif(ks[1], (num_filters,), fan_c),
        w2=unif(ks[2], (dnn_size, 14 * num_filters), 14 * num_filters),
        b2=unif(ks[3], (dnn_size,), 14 * num_filters),
        w3=unif(ks[4], (1, dnn_size), dnn_size),
        b3=unif(ks[5], (1,), dnn_size),
    )


if __name__ == "__main__":
    key = jax.random.PRNGKey(0)
    kx, kp = jax.random.split(key)

    B, C, L = 2, 4, 62   # L=62 -> conv 30 -> pool 14 (matches dnn2 in_features)
    x = jax.random.normal(kx, (B, C, L), dtype=jnp.float32)
    params = init_params(kp)

    out = jax.block_until_ready(cnn1d_forward(x, params))
    ref = jax.block_until_ready(cnn1d_reference(x, params))

    assert out.shape == (B, 1) and out.dtype == jnp.float32
    # Tolerance loosened vs. the HIGHEST-precision reference because dnn2 now
    # runs at DEFAULT (bf16-pass) MXU precision per the perf review.
    np.testing.assert_allclose(np.asarray(out), np.asarray(ref), rtol=2e-2, atol=1e-2)
    print("KERNEL_OK")
</pallas_src>

<mosaic_0001>
module attributes {stable_mosaic.version = 11 : i64} {
  func.func @cnn1d_kernel(%arg0: i32, %arg1: memref<32x2x16xf32, #tpu.memory_space<vmem>>, %arg2: memref<32x1x16xf32, #tpu.memory_space<vmem>>, %arg3: memref<2xf32, #tpu.memory_space<smem>>, %arg4: memref<14x1024xf32, #tpu.memory_space<vmem>>, %arg5: memref<1x1024xf32, #tpu.memory_space<vmem>>, %arg6: memref<1x1024xf32, #tpu.memory_space<vmem>>, %arg7: memref<2x1xf32, #tpu.memory_space<vmem>>) attributes {dimension_semantics = [#tpu.dimension_semantics<arbitrary>], iteration_bounds = array<i64: 1>, scalar_prefetch = 0 : i64, scratch_operands = 0 : i64, tpu.core_type = #tpu.core_type<tc>, window_params = [{pipeline_mode = #tpu.pipeline_mode<synchronous>, transform_indices = @transform_0, window_bounds = array<i64: 32, 2, 16>}, {pipeline_mode = #tpu.pipeline_mode<synchronous>, transform_indices = @transform_1, window_bounds = array<i64: 32, 1, 16>}, {transform_indices = @transform_2, window_bounds = array<i64: 2>}, {pipeline_mode = #tpu.pipeline_mode<synchronous>, transform_indices = @transform_3, window_bounds = array<i64: 14, 1024>}, {pipeline_mode = #tpu.pipeline_mode<synchronous>, transform_indices = @transform_4, window_bounds = array<i64: 1, 1024>}, {pipeline_mode = #tpu.pipeline_mode<synchronous>, transform_indices = @transform_5, window_bounds = array<i64: 1, 1024>}, {pipeline_mode = #tpu.pipeline_mode<synchronous>, transform_indices = @transform_6, window_bounds = array<i64: 2, 1>}]} {
    %c0 = arith.constant 0 : index
    %c0_0 = arith.constant 0 : index
    %c0_1 = arith.constant 0 : index
    %0 = vector.load %arg1[%c0, %c0_0, %c0_1] : memref<32x2x16xf32, #tpu.memory_space<vmem>>, vector<32x2x16xf32>
    %c0_2 = arith.constant 0 : index
    %c0_3 = arith.constant 0 : index
    %c0_4 = arith.constant 0 : index
    %1 = vector.load %arg2[%c0_2, %c0_3, %c0_4] : memref<32x1x16xf32, #tpu.memory_space<vmem>>, vector<32x1x16xf32>
    %2 = vector.broadcast %1 : vector<32x1x16xf32> to vector<32x2x16xf32>
    %3 = arith.mulf %0, %2 : vector<32x2x16xf32>
    %4 = vector.extract_strided_slice %3 {offsets = [0, 0, 0], sizes = [16, 2, 16], strides = [1, 1, 1]} : vector<32x2x16xf32> to vector<16x2x16xf32>
    %cst = arith.constant dense<0.000000e+00> : vector<2x16xf32>
    %5 = vector.multi_reduction <add>, %4, %cst [0] : vector<16x2x16xf32> to vector<2x16xf32>
    %6 = vector.extract_strided_slice %3 {offsets = [16, 0, 0], sizes = [16, 2, 16], strides = [1, 1, 1]} : vector<32x2x16xf32> to vector<16x2x16xf32>
    %cst_5 = arith.constant dense<0.000000e+00> : vector<2x16xf32>
    %7 = vector.multi_reduction <add>, %6, %cst_5 [0] : vector<16x2x16xf32> to vector<2x16xf32>
    %c0_6 = arith.constant 0 : index
    %8 = memref.load %arg3[%c0_6] : memref<2xf32, #tpu.memory_space<smem>>
    %9 = vector.broadcast %8 : f32 to vector<2x16xf32>
    %10 = arith.addf %5, %9 : vector<2x16xf32>
    %cst_7 = arith.constant 0.000000e+00 : f32
    %11 = vector.broadcast %cst_7 : f32 to vector<2x16xf32>
    %12 = arith.maximumf %10, %11 : vector<2x16xf32>
    %13 = vector.broadcast %8 : f32 to vector<2x16xf32>
    %14 = arith.addf %7, %13 : vector<2x16xf32>
    %cst_8 = arith.constant 0.000000e+00 : f32
    %15 = vector.broadcast %cst_8 : f32 to vector<2x16xf32>
    %16 = arith.maximumf %14, %15 : vector<2x16xf32>
    %17 = arith.maximumf %12, %16 : vector<2x16xf32>
    %18 = vector.extract_strided_slice %17 {offsets = [0, 0], sizes = [2, 14], strides = [1, 1]} : vector<2x16xf32> to vector<2x14xf32>
    %19 = vector.extract_strided_slice %17 {offsets = [0, 1], sizes = [2, 14], strides = [1, 1]} : vector<2x16xf32> to vector<2x14xf32>
    %20 = arith.maximumf %18, %19 : vector<2x14xf32>
    %c0_9 = arith.constant 0 : index
    %c0_10 = arith.constant 0 : index
    %21 = vector.load %arg4[%c0_9, %c0_10] : memref<14x1024xf32, #tpu.memory_space<vmem>>, vector<14x1024xf32>
    %cst_11 = arith.constant dense<0.000000e+00> : vector<2x1024xf32>
    %22 = tpu.matmul %20, %21, %cst_11 {dimension_numbers = #tpu.dot_dimension_numbers<[1], [0], [0], [1], [0, 0, 1, 1], [], []>} : vector<2x14xf32>, vector<14x1024xf32>, vector<2x1024xf32> -> vector<2x1024xf32>
    %c0_12 = arith.constant 0 : index
    %c0_13 = arith.constant 0 : index
    %23 = vector.load %arg5[%c0_12, %c0_13] : memref<1x1024xf32, #tpu.memory_space<vmem>>, vector<1x1024xf32>
    %24 = vector.broadcast %23 : vector<1x1024xf32> to vector<2x1024xf32>
    %25 = arith.addf %22, %24 : vector<2x1024xf32>
    %cst_14 = arith.constant 0.000000e+00 : f32
    %26 = vector.broadcast %cst_14 : f32 to vector<2x1024xf32>
    %27 = arith.maximumf %25, %26 : vector<2x1024xf32>
    %c0_15 = arith.constant 0 : index
    %c0_16 = arith.constant 0 : index
    %28 = vector.load %arg6[%c0_15, %c0_16] : memref<1x1024xf32, #tpu.memory_space<vmem>>, vector<1x1024xf32>
    %29 = vector.broadcast %28 : vector<1x1024xf32> to vector<2x1024xf32>
    %30 = arith.mulf %27, %29 : vector<2x1024xf32>
    %cst_17 = arith.constant dense<0.000000e+00> : vector<2xf32>
    %31 = vector.multi_reduction <add>, %30, %cst_17 [1] : vector<2x1024xf32> to vector<2xf32>
    %32 = vector.shape_cast %31 : vector<2xf32> to vector<2x1xf32>
    %c1 = arith.constant 1 : index
    %33 = memref.load %arg3[%c1] : memref<2xf32, #tpu.memory_space<smem>>
    %34 = vector.broadcast %33 : f32 to vector<2x1xf32>
    %35 = arith.addf %32, %34 : vector<2x1xf32>
    %c0_18 = arith.constant 0 : index
    %c0_19 = arith.constant 0 : index
    %36 = vector.load %arg7[%c0_18, %c0_19] : memref<2x1xf32, #tpu.memory_space<vmem>>, vector<2x1xf32>
    tpu.vector_store %arg7[%c0_18, %c0_19], %35 {strides = array<i32>} : memref<2x1xf32, #tpu.memory_space<vmem>>, vector<2x1xf32>,
    return
  }
  func.func @transform_0(%arg0: i32) -> (i32, i32, i32) {
    %c0_i32 = arith.constant 0 : i32
    %c0_i32_0 = arith.constant 0 : i32
    %c0_i32_1 = arith.constant 0 : i32
    %c0_i32_2 = arith.constant 0 : i32
    return %c0_i32, %c0_i32_0, %c0_i32_1 : i32, i32, i32
  }
  func.func @transform_1(%arg0: i32) -> (i32, i32, i32) {
    %c0_i32 = arith.constant 0 : i32
    %c0_i32_0 = arith.constant 0 : i32
    %c0_i32_1 = arith.constant 0 : i32
    %c0_i32_2 = arith.constant 0 : i32
    return %c0_i32, %c0_i32_0, %c0_i32_1 : i32, i32, i32
  }
  func.func @transform_2(%arg0: i32) -> i32 {
    %c0_i32 = arith.constant 0 : i32
    %c0_i32_0 = arith.constant 0 : i32
    return %c0_i32 : i32
  }
  func.func @transform_3(%arg0: i32) -> (i32, i32) {
    %c0_i32 = arith.constant 0 : i32
    %c0_i32_0 = arith.constant 0 : i32
    %c0_i32_1 = arith.constant 0 : i32
    return %c0_i32, %c0_i32_0 : i32, i32
  }
  func.func @transform_4(%arg0: i32) -> (i32, i32) {
    %c0_i32 = arith.constant 0 : i32
    %c0_i32_0 = arith.constant 0 : i32
    %c0_i32_1 = arith.constant 0 : i32
    return %c0_i32, %c0_i32_0 : i32, i32
  }
  func.func @transform_5(%arg0: i32) -> (i32, i32) {
    %c0_i32 = arith.constant 0 : i32
    %c0_i32_0 = arith.constant 0 : i32
    %c0_i32_1 = arith.constant 0 : i32
    return %c0_i32, %c0_i32_0 : i32, i32
  }
  func.func @transform_6(%arg0: i32) -> (i32, i32) {
    %c0_i32 = arith.constant 0 : i32
    %c0_i32_0 = arith.constant 0 : i32
    %c0_i32_1 = arith.constant 0 : i32
    return %c0_i32, %c0_i32_0 : i32, i32
  }
}

</mosaic_0001>

<bundles_post_ra>
// kernel: tpu_custom_call.1
= control target key start
LH: loop header
LB: loop body
LE: loop exit
PB: predicated region body
PF: predicated region fallthrough
CT: control target
= control target key end

     0   :  { %11 = vsyncpa [#allocation4], 0  ;;  %s997_s0 = inlined_call_operand.vmem [shape: f32[32,2,16], index: 0, kind: input, shape index: {}]   ;;  %s998_s1 = inlined_call_operand.vmem [shape: f32[32,1,16], index: 1, kind: input, shape index: {}]   ;;  %s999_s2 = inlined_call_operand.vmem [shape: f32[2], index: 2, kind: input, shape index: {}]   ;;  %s1000_s3 = inlined_call_operand.hbm [shape: f32[14,1024], index: 3, kind: input, shape index: {}]   ;;  %s1001_s4 = inlined_call_operand.vmem [shape: f32[1,1024], index: 4, kind: input, shape index: {}]   ;;  %s1002_s5 = inlined_call_operand.vmem [shape: f32[1,1024], index: 5, kind: input, shape index: {}]   ;;  %s1003_s6 = inlined_call_operand.vmem [shape: f32[2,1], index: 6, kind: output, shape index: {}]  }
   0x1   :  { %s22_s23 = sshll.u32 %s999_s2, 4  ;;  %s23_s23 = int_to_ptr.vmem [resolvable:$true] %s22_s23 }
   0x2   :  { %12 = vsyncpa [#allocation3], 0  ;;  %s30_s26 = sshll.u32 %s1000_s3, 4  ;;  %s699_s27 = smov [#allocation2]   ;;  %s31_s26 = int_to_ptr.hbm [resolvable:$true] %s30_s26 }
   0x3   :  { %25 = dma.vmem_to_smem %s23_s23, 16, %s699_s27, [#allocation4]  }
   0x4   :  { %s700_s28 = smov [#allocation5]   ;;  %s701_s30 = smov 1024  }
   0x5   :  { %s32_s29 = sshll.u32 %s700_s28, 4  ;;  %s702_s7 = smov 64   ;;  %s33_s29 = int_to_ptr.vmem [resolvable:$true] %s32_s29 }
   0x6   :  { %38 = dma.hbm_to_vmem [thread:$0]  %s31_s26, 2048, %s33_s29, [#allocation3], %s701_s30, %s701_s30, %s702_s7  }
   0x7   :  { %695 = dma.done.wait [#allocation4], 16  }
   0x8   :  { %696 = vsyncadd [#allocation4], 4294967280 }
   0x9   :  { %697 = dma.done.wait [#allocation3], 2048  }
   0xa   :  { %698 = vsyncadd [#allocation3], 4294965248 }
   0xb   :  { %51 = sfence }
   0xc   :  { %v627_v0 = vld [vmem:[%s998_s1] ss:$0 sm:$0xff]  ;;  %v628_v2 = vld [vmem:[%s998_s1 + $0x1] ss:$0 sm:$0xff]  ;;  %v629_v3 = vld [vmem:[%s998_s1 + $0x2] ss:$0 sm:$0xff] }
   0xd   :  { %v52_v1 = vld [vmem:[%s997_s0] sm:$0x3]  ;;  %v53_v4 = vld [vmem:[%s997_s0 + $0x2] sm:$0x3]  ;;  %v54_v5 = vld [vmem:[%s997_s0 + $0x4] sm:$0x3] }
   0xe   :  { %v55_v6 = vld [vmem:[%s997_s0 + $0x6] sm:$0x3]  ;;  %v630_v7 = vld [vmem:[%s998_s1 + $0x3] ss:$0 sm:$0xff]  ;;  %v56_v8 = vld [vmem:[%s997_s0 + $0x8] sm:$0x3]  ;;  %v212_v11 = vmul.f32 %v627_v0, %v52_v1  ;;  %v213_v15 = vmul.f32 %v628_v2, %v53_v4  ;;  %v214_v16 = vmul.f32 %v629_v3, %v54_v5 }
   0xf   :  { %v631_v9 = vld [vmem:[%s998_s1 + $0x4] ss:$0 sm:$0xff]  ;;  %v643_v10 = vld [vmem:[%s998_s1 + $0x10] ss:$0 sm:$0xff]  ;;  %v68_v12 = vld [vmem:[%s997_s0 + $0x20] sm:$0x3]  ;;  %v215_v23 = vmul.f32 %v630_v7, %v55_v6 }
  0x10   :  { %v644_v13 = vld [vmem:[%s998_s1 + $0x11] ss:$0 sm:$0xff]  ;;  %v645_v14 = vld [vmem:[%s998_s1 + $0x12] ss:$0 sm:$0xff]  ;;  %v57_v17 = vld [vmem:[%s997_s0 + $0xa] sm:$0x3]  ;;  %v216_v26 = vmul.f32 %v631_v9, %v56_v8  ;;  %v228_v27 = vmul.f32 %v643_v10, %v68_v12 }
  0x11   :  { %v69_v18 = vld [vmem:[%s997_s0 + $0x22] sm:$0x3]  ;;  %v70_v19 = vld [vmem:[%s997_s0 + $0x24] sm:$0x3]  ;;  %v71_v20 = vld [vmem:[%s997_s0 + $0x26] sm:$0x3] }
  0x12   :  { %v632_v21 = vld [vmem:[%s998_s1 + $0x5] ss:$0 sm:$0xff]  ;;  %v646_v22 = vld [vmem:[%s998_s1 + $0x13] ss:$0 sm:$0xff]  ;;  %vm244_vm0 = vcmask 123904   ;;  %v229_v31 = vmul.f32 %v644_v13, %v69_v18  ;;  %v230_v32 = vmul.f32 %v645_v14, %v70_v19  ;;  %vm357_vm1 = vcmask 1045504  }
  0x13   :  { %v633_v24 = vld [vmem:[%s998_s1 + $0x6] ss:$0 sm:$0xff]  ;;  %v647_v25 = vld [vmem:[%s998_s1 + $0x14] ss:$0 sm:$0xff]  ;;  %v245_v28 = vsel %vm244_vm0, %v212_v11, 0.0  ;;  %v246_v33 = vsel %vm244_vm0, %v213_v15, 0.0  ;;  %v217_v39 = vmul.f32 %v632_v21, %v57_v17  ;;  %v231_v40 = vmul.f32 %v646_v22, %v71_v20 }
  0x14   :  { %v58_v29 = vld [vmem:[%s997_s0 + $0xc] sm:$0x3]  ;;  %v72_v30 = vld [vmem:[%s997_s0 + $0x28] sm:$0x3]  ;;  %v248_v34 = vsel %vm244_vm0, %v214_v16, 0.0  ;;  %v247_v36 = vadd.f32 %v246_v33, %v245_v28  ;;  %v250_v41 = vsel %vm244_vm0, %v215_v23, 0.0 }
  0x15   :  { %v634_v35 = vld [vmem:[%s998_s1 + $0x7] ss:$0 sm:$0xff]  ;;  %v59_v37 = vld [vmem:[%s997_s0 + $0xe] sm:$0x3]  ;;  %v648_v38 = vld [vmem:[%s998_s1 + $0x15] ss:$0 sm:$0xff]  ;;  %v218_v44 = vmul.f32 %v633_v24, %v58_v29  ;;  %v232_v45 = vmul.f32 %v647_v25, %v72_v30 }
  0x16   :  { %v73_v42 = vld [vmem:[%s997_s0 + $0x2a] sm:$0x3]  ;;  %v635_v43 = vld [vmem:[%s998_s1 + $0x8] ss:$0 sm:$0xff]  ;;  %v249_v46 = vadd.f32 %v248_v34, %v247_v36  ;;  %v649_v47 = vld [vmem:[%s998_s1 + $0x16] ss:$0 sm:$0xff]  ;;  %v219_v55 = vmul.f32 %v634_v35, %v59_v37 }
  0x17   :  { %v252_v48 = vsel %vm244_vm0, %v216_v26, 0.0  ;;  %v276_v49 = vsel %vm244_vm0, %v228_v27, 0.0  ;;  %v277_v50 = vsel %vm244_vm0, %v229_v31, 0.0  ;;  %v279_v51 = vsel %vm244_vm0, %v230_v32, 0.0  ;;  %v60_v52 = vld [vmem:[%s997_s0 + $0x10] sm:$0x3] }
  0x18   :  { %v61_v53 = vld [vmem:[%s997_s0 + $0x12] sm:$0x3]  ;;  %v74_v54 = vld [vmem:[%s997_s0 + $0x2c] sm:$0x3]  ;;  %v251_v56 = vadd.f32 %v250_v41, %v249_v46  ;;  %v278_v57 = vadd.f32 %v277_v50, %v276_v49  ;;  %v636_v58 = vld [vmem:[%s998_s1 + $0x9] ss:$0 sm:$0xff]  ;;  %v233_v60 = vmul.f32 %v648_v38, %v73_v42  ;;  %v220_v8 = vmul.f32 %v635_v43, %v60_v52 }
  0x19   :  { %v650_v59 = vld [vmem:[%s998_s1 + $0x17] ss:$0 sm:$0xff]  ;;  %v254_v61 = vsel %vm244_vm0, %v217_v39, 0.0  ;;  %v281_v62 = vsel %vm244_vm0, %v231_v40, 0.0  ;;  %v62_v63 = vld [vmem:[%s997_s0 + $0x14] sm:$0x3]  ;;  %v234_v9 = vmul.f32 %v649_v47, %v74_v54  ;;  %v221_v17 = vmul.f32 %v636_v58, %v61_v53 }
  0x1a   :  { %v75_v0 = vld [vmem:[%s997_s0 + $0x2e] sm:$0x3]  ;;  %v76_v1 = vld [vmem:[%s997_s0 + $0x30] sm:$0x3]  ;;  %v637_v2 = vld [vmem:[%s998_s1 + $0xa] ss:$0 sm:$0xff]  ;;  %v253_v3 = vadd.f32 %v252_v48, %v251_v56  ;;  %v280_v4 = vadd.f32 %v279_v51, %v278_v57 }
  0x1b   :  { %v638_v5 = vld [vmem:[%s998_s1 + $0xb] ss:$0 sm:$0xff]  ;;  %v651_v6 = vld [vmem:[%s998_s1 + $0x18] ss:$0 sm:$0xff]  ;;  %v652_v7 = vld [vmem:[%s998_s1 + $0x19] ss:$0 sm:$0xff]  ;;  %v235_v18 = vmul.f32 %v650_v59, %v75_v0  ;;  %v222_v28 = vmul.f32 %v637_v2, %v62_v63 }
  0x1c   :  { %v256_v10 = vsel %vm244_vm0, %v218_v44, 0.0  ;;  %v283_v11 = vsel %vm244_vm0, %v232_v45, 0.0  ;;  %v255_v12 = vadd.f32 %v254_v61, %v253_v3  ;;  %v258_v13 = vsel %vm244_vm0, %v219_v55, 0.0  ;;  %v327_v15 = vld [vmem:[#allocation5 + $0x40] sm:$0x3f]  ;;  %s956_s24 = sld [smem:[#allocation2]] }
  0x1d   :  { %v282_v14 = vadd.f32 %v281_v62, %v280_v4  ;;  %v328_v16 = vld [vmem:[#allocation5 + $0x48] sm:$0x3f]  ;;  %v285_v19 = vsel %vm244_vm0, %v233_v60, 0.0  ;;  %v329_v20 = vld [vmem:[#allocation5 + $0x50] sm:$0x3f]  ;;  %605 = vmatpush.msk.msra.mxu0 %vm357_vm1, %v327_v15  ;;  %v236_v29 = vmul.f32 %v651_v6, %v76_v1  ;;  %v260_v30 = vsel %vm244_vm0, %v220_v8, 0.0 }
  0x1e   :  { %v330_v21 = vld [vmem:[#allocation5 + $0x58] sm:$0x3f]  ;;  %v63_v22 = vld [vmem:[%s997_s0 + $0x16] sm:$0x3]  ;;  %v77_v23 = vld [vmem:[%s997_s0 + $0x32] sm:$0x3]  ;;  %v257_v24 = vadd.f32 %v256_v10, %v255_v12  ;;  %607 = vmatpush.msk.msra.mxu1 %vm357_vm1, %v328_v16  ;;  %609 = vmatpush.msk.msra.mxu2 %vm357_vm1, %v329_v20 }
  0x1f   :  { %v284_v25 = vadd.f32 %v283_v11, %v282_v14  ;;  %v639_v26 = vld [vmem:[%s998_s1 + $0xc] ss:$0 sm:$0xff]  ;;  %v653_v27 = vld [vmem:[%s998_s1 + $0x1a] ss:$0 sm:$0xff]  ;;  %v287_v31 = vsel %vm244_vm0, %v234_v9, 0.0  ;;  %611 = vmatpush.msk.msra.mxu3 %vm357_vm1, %v330_v21  ;;  %v223_v38 = vmul.f32 %v638_v5, %v63_v22  ;;  %v237_v39 = vmul.f32 %v652_v7, %v77_v23 }
  0x20   :  { %v64_v32 = vld [vmem:[%s997_s0 + $0x18] sm:$0x3]  ;;  %v78_v33 = vld [vmem:[%s997_s0 + $0x34] sm:$0x3]  ;;  %v259_v34 = vadd.f32 %v258_v13, %v257_v24  ;;  %v640_v36 = vld [vmem:[%s998_s1 + $0xd] ss:$0 sm:$0xff] }
  0x21   :  { %v286_v35 = vadd.f32 %v285_v19, %v284_v25  ;;  %v654_v37 = vld [vmem:[%s998_s1 + $0x1b] ss:$0 sm:$0xff]  ;;  %v262_v40 = vsel %vm244_vm0, %v221_v17, 0.0  ;;  %v289_v41 = vsel %vm244_vm0, %v235_v18, 0.0  ;;  %v79_v43 = vld [vmem:[%s997_s0 + $0x36] sm:$0x3]  ;;  %v224_v48 = vmul.f32 %v639_v26, %v64_v32 }
  0x22   :  { %v65_v42 = vld [vmem:[%s997_s0 + $0x1a] sm:$0x3]  ;;  %v261_v44 = vadd.f32 %v260_v30, %v259_v34  ;;  %v641_v46 = vld [vmem:[%s998_s1 + $0xe] ss:$0 sm:$0xff]  ;;  %v655_v47 = vld [vmem:[%s998_s1 + $0x1c] ss:$0 sm:$0xff]  ;;  %v238_v49 = vmul.f32 %v653_v27, %v78_v33  ;;  %v239_v59 = vmul.f32 %v654_v37, %v79_v43 }
  0x23   :  { %v288_v45 = vadd.f32 %v287_v31, %v286_v35  ;;  %v264_v50 = vsel %vm244_vm0, %v222_v28, 0.0  ;;  %v291_v51 = vsel %vm244_vm0, %v236_v29, 0.0  ;;  %v66_v52 = vld [vmem:[%s997_s0 + $0x1c] sm:$0x3]  ;;  %v80_v53 = vld [vmem:[%s997_s0 + $0x38] sm:$0x3]  ;;  %v225_v58 = vmul.f32 %v640_v36, %v65_v42 }
  0x24   :  { %v263_v54 = vadd.f32 %v262_v40, %v261_v44  ;;  %v642_v56 = vld [vmem:[%s998_s1 + $0xf] ss:$0 sm:$0xff]  ;;  %v656_v57 = vld [vmem:[%s998_s1 + $0x1d] ss:$0 sm:$0xff]  ;;  %v266_v60 = vsel %vm244_vm0, %v223_v38, 0.0  ;;  %v293_v61 = vsel %vm244_vm0, %v237_v39, 0.0  ;;  %v226_v3 = vmul.f32 %v641_v46, %v66_v52 }
  0x25   :  { %v290_v55 = vadd.f32 %v289_v41, %v288_v45  ;;  %v67_v62 = vld [vmem:[%s997_s0 + $0x1e] sm:$0x3]  ;;  %v81_v63 = vld [vmem:[%s997_s0 + $0x3a] sm:$0x3]  ;;  %v240_v4 = vmul.f32 %v655_v47, %v80_v53  ;;  %v268_v5 = vsel %vm244_vm0, %v224_v48, 0.0  ;;  %v295_v6 = vsel %vm244_vm0, %v238_v49, 0.0 }
  0x26   :  { %v265_v0 = vadd.f32 %v264_v50, %v263_v54  ;;  %v657_v2 = vld [vmem:[%s998_s1 + $0x1e] ss:$0 sm:$0xff]  ;;  %v82_v7 = vld [vmem:[%s997_s0 + $0x3c] sm:$0x3]  ;;  %v658_v10 = vld [vmem:[%s998_s1 + $0x1f] ss:$0 sm:$0xff]  ;;  %v227_v11 = vmul.f32 %v642_v56, %v67_v62  ;;  %v241_v12 = vmul.f32 %v656_v57, %v81_v63  ;;  %v308_v29 = vstv %s956_s24 }
  0x27   :  { %v292_v1 = vadd.f32 %v291_v51, %v290_v55  ;;  %v270_v13 = vsel %vm244_vm0, %v225_v58, 0.0  ;;  %v297_v14 = vsel %vm244_vm0, %v239_v59, 0.0  ;;  %v83_v15 = vld [vmem:[%s997_s0 + $0x3e] sm:$0x3]  ;;  %v242_v18 = vmul.f32 %v657_v2, %v82_v7  ;;  %s703_s0 = smov 127   ;;  %v319_v40 = vld [vmem:[#allocation5] sm:$0xff] }
  0x28   :  { %v267_v8 = vadd.f32 %v266_v60, %v265_v0  ;;  %v272_v19 = vsel %vm244_vm0, %v226_v3, 0.0  ;;  %v299_v20 = vsel %vm244_vm0, %v240_v4, 0.0  ;;  %v243_v23 = vmul.f32 %v658_v10, %v83_v15  ;;  %v320_v41 = vld [vmem:[#allocation5 + $0x8] sm:$0xff]  ;;  %v321_v42 = vld [vmem:[#allocation5 + $0x10] sm:$0xff]  ;;  %397 = vmatpush.msra.mxu0 %v319_v40  ;;  %v322_v43 = vld [vmem:[#allocation5 + $0x18] sm:$0xff] }
  0x29   :  { %v294_v9 = vadd.f32 %v293_v61, %v292_v1  ;;  %v274_v24 = vsel %vm244_vm0, %v227_v11, 0.0  ;;  %v301_v25 = vsel %vm244_vm0, %v241_v12, 0.0  ;;  %v303_v28 = vsel %vm244_vm0, %v242_v18, 0.0  ;;  %417 = vmatpush.msra.mxu1 %v320_v41  ;;  %437 = vmatpush.msra.mxu2 %v321_v42  ;;  %v333_v44 = vld [vmem:[#allocation5 + $0x70] sm:$0x3f]  ;;  %v323_v49 = vld [vmem:[#allocation5 + $0x20] sm:$0xff] }
  0x2a   :  { %v269_v16 = vadd.f32 %v268_v5, %v267_v8  ;;  %v305_v32 = vsel %vm244_vm0, %v243_v23, 0.0  ;;  %457 = vmatpush.msra.mxu3 %v322_v43  ;;  %v331_v45 = vld [vmem:[#allocation5 + $0x60] sm:$0x3f]  ;;  %v334_v46 = vld [vmem:[#allocation5 + $0x78] sm:$0x3f]  ;;  %v325_v48 = vld [vmem:[#allocation5 + $0x30] sm:$0xff] }
  0x2b   :  { %v296_v17 = vadd.f32 %v295_v6, %v294_v9  ;;  %617 = vmatpush.msk.msrb.mxu2 %vm357_vm1, %v333_v44  ;;  %613 = vmatpush.msk.msrb.mxu0 %vm357_vm1, %v331_v45  ;;  %v332_v47 = vld [vmem:[#allocation5 + $0x68] sm:$0x3f]  ;;  %v326_v50 = vld [vmem:[#allocation5 + $0x38] sm:$0xff]  ;;  %vm353_vm2 = vcmask 113664   ;;  %v335_v54 = vld [vmem:[%s1001_s4] sm:$0xff]  ;;  %vm576_vm3 = vcmask 1041408  }
  0x2c   :  { %v271_v21 = vadd.f32 %v270_v13, %v269_v16  ;;  %619 = vmatpush.msk.msrb.mxu3 %vm357_vm1, %v334_v46  ;;  %615 = vmatpush.msk.msrb.mxu1 %vm357_vm1, %v332_v47  ;;  %v324_v51 = vld [vmem:[#allocation5 + $0x28] sm:$0xff]  ;;  %v337_v55 = vperm.slane %v335_v54, 0  ;;  %v338_v56 = vperm.slane %v335_v54, 1  ;;  %v550_v57 = vld [vmem:[%s1002_s5] sm:$0xff]  ;;  %v339_v2 = vperm.slane %v335_v54, 2  ;;  %s621_s4 = sld [smem:[#allocation2 + $0x1]] }
  0x2d   :  { %v298_v22 = vadd.f32 %v297_v14, %v296_v17  ;;  %517 = vmatpush.msrb.mxu2 %v325_v48  ;;  %477 = vmatpush.msrb.mxu0 %v323_v49  ;;  %v552_v62 = vperm.slane %v550_v57, 0  ;;  %v553_v63 = vperm.slane %v550_v57, 1  ;;  %v340_v3 = vperm.slane %v335_v54, 3 }
  0x2e   :  { %v273_v26 = vadd.f32 %v272_v19, %v271_v21  ;;  %537 = vmatpush.msrb.mxu3 %v326_v50  ;;  %497 = vmatpush.msrb.mxu1 %v324_v51  ;;  %v341_v4 = vperm.slane %v335_v54, 4  ;;  %v342_v5 = vperm.slane %v335_v54, 5  ;;  %v554_v11 = vperm.slane %v550_v57, 2 }
  0x2f   :  { %v300_v27 = vadd.f32 %v299_v20, %v298_v22  ;;  %v555_v13 = vperm.slane %v550_v57, 3  ;;  %v556_v17 = vperm.slane %v550_v57, 4  ;;  %vm597_vm4 = vcmask 1024  }
  0x30   :  { %v275_v30 = vadd.f32 %v274_v24, %v273_v26  ;;  %v557_v24 = vperm.slane %v550_v57, 5 }
  0x31   :  { %v302_v31 = vadd.f32 %v301_v25, %v300_v27  ;;  %v343_v25 = vperm.slane %v335_v54, 6 }
  0x32   :  { %v309_v34 = vadd.f32 %v308_v29, %v275_v30 }
  0x33   :  { %v304_v33 = vadd.f32 %v303_v28, %v302_v31 }
  0x34   :  { %v310_v36 = vmax.f32 %v309_v34, 0.0 }
  0x35   :  { %v306_v35 = vadd.f32 %v305_v32, %v304_v33 }
  0x37   :  { %v311_v37 = vadd.f32 %v308_v29, %v306_v35  ;;  %v344_v29 = vperm.slane %v335_v54, 7  ;;  %v558_v35 = vperm.slane %v550_v57, 6 }
  0x39   :  { %v312_v38 = vmax.f32 %v311_v37, 0.0  ;;  %v559_v37 = vperm.slane %v550_v57, 7 }
  0x3b   :  { %v313_v39 = vmax.f32 %v310_v36, %v312_v38 }
  0x3d   :  { %315 = vrot.lane.b32.xlu0 %v313_v39, %s703_s0 }
  0xaf   :  { %v316_v52 = vpop.permute.xlu0 %315 }
  0xb0   :  { %v318_v53 = vmax.f32 %v313_v39, %v316_v52 }
  0xb2   :  { %606 = vmatmul.msk.f32.vlgmr.msra.gmra.mxu0 %vm353_vm2, %v318_v53  ;;  %608 = vmatmul.msk.f32.vlgmr.msra.gmra.mxu1 %vm353_vm2, %v318_v53 }
  0xb3   :  { %610 = vmatmul.msk.f32.vlgmr.msra.gmra.mxu2 %vm353_vm2, %v318_v53  ;;  %612 = vmatmul.msk.f32.vlgmr.msra.gmra.mxu3 %vm353_vm2, %v318_v53 }
  0xba   :  { %614 = vmatmul.msk.f32.vlgmr.msrb.gmra.mxu0 %vm353_vm2, %v318_v53  ;;  %616 = vmatmul.msk.f32.vlgmr.msrb.gmra.mxu1 %vm353_vm2, %v318_v53 }
  0xbb   :  { %618 = vmatmul.msk.f32.vlgmr.msrb.gmra.mxu2 %vm353_vm2, %v318_v53  ;;  %620 = vmatmul.msk.f32.vlgmr.msrb.gmra.mxu3 %vm353_vm2, %v318_v53 }
 0x12f   :  { %v399_v58 = vpop.f32.mrf.mxu0  ;;  %v419_v59 = vpop.f32.mrf.mxu1 }
 0x130   :  { %v400_v60 = vadd.f32 %v399_v58, %v337_v55  ;;  %v420_v61 = vadd.f32 %v419_v59, %v338_v56  ;;  %v595_v55 = vstv %s621_s4 }
 0x132   :  { %v542_v0 = vmax.f32 %v400_v60, 0.0  ;;  %v543_v1 = vmax.f32 %v420_v61, 0.0 }
 0x134   :  { %v568_v6 = vmul.f32 %v552_v62, %v542_v0  ;;  %v569_v7 = vmul.f32 %v553_v63, %v543_v1 }
 0x136   :  { %v439_v8 = vpop.f32.mrf.mxu2  ;;  %v459_v9 = vpop.f32.mrf.mxu3  ;;  %v577_v19 = vsel %vm576_vm3, %v568_v6, 0.0  ;;  %v578_v20 = vsel %vm576_vm3, %v569_v7, 0.0 }
 0x137   :  { %v440_v10 = vadd.f32 %v439_v8, %v339_v2  ;;  %v460_v12 = vadd.f32 %v459_v9, %v340_v3  ;;  %v479_v14 = vpop.f32.mrf.mxu0  ;;  %v499_v15 = vpop.f32.mrf.mxu1  ;;  %v579_v30 = vadd.f32 %v578_v20, %v577_v19 }
 0x138   :  { %v480_v16 = vadd.f32 %v479_v14, %v341_v4  ;;  %v500_v18 = vadd.f32 %v499_v15, %v342_v5 }
 0x139   :  { %v544_v21 = vmax.f32 %v440_v10, 0.0  ;;  %v545_v22 = vmax.f32 %v460_v12, 0.0 }
 0x13a   :  { %v546_v23 = vmax.f32 %v480_v16, 0.0  ;;  %v547_v28 = vmax.f32 %v500_v18, 0.0 }
 0x13b   :  { %v570_v26 = vmul.f32 %v554_v11, %v544_v21  ;;  %v571_v27 = vmul.f32 %v555_v13, %v545_v22 }
 0x13c   :  { %v572_v32 = vmul.f32 %v556_v17, %v546_v23  ;;  %v573_v39 = vmul.f32 %v557_v24, %v547_v28 }
 0x13d   :  { %v580_v31 = vsel %vm576_vm3, %v570_v26, 0.0  ;;  %v582_v38 = vsel %vm576_vm3, %v571_v27, 0.0 }
 0x13e   :  { %v581_v33 = vadd.f32 %v580_v31, %v579_v30  ;;  %v519_v34 = vpop.f32.mrf.mxu2  ;;  %v539_v36 = vpop.f32.mrf.mxu3  ;;  %v584_v43 = vsel %vm576_vm3, %v572_v32, 0.0  ;;  %v586_v47 = vsel %vm576_vm3, %v573_v39, 0.0 }
 0x13f   :  { %v520_v40 = vadd.f32 %v519_v34, %v343_v25  ;;  %v540_v41 = vadd.f32 %v539_v36, %v344_v29 }
 0x140   :  { %v583_v42 = vadd.f32 %v582_v38, %v581_v33 }
 0x141   :  { %v548_v44 = vmax.f32 %v520_v40, 0.0  ;;  %v549_v45 = vmax.f32 %v540_v41, 0.0 }
 0x142   :  { %v585_v46 = vadd.f32 %v584_v43, %v583_v42 }
 0x143   :  { %v574_v48 = vmul.f32 %v558_v35, %v548_v44  ;;  %v575_v49 = vmul.f32 %v559_v37, %v549_v45 }
 0x144   :  { %v587_v50 = vadd.f32 %v586_v47, %v585_v46 }
 0x145   :  { %v588_v51 = vsel %vm576_vm3, %v574_v48, 0.0  ;;  %v590_v53 = vsel %vm576_vm3, %v575_v49, 0.0 }
 0x146   :  { %v589_v52 = vadd.f32 %v588_v51, %v587_v50 }
 0x148   :  { %v591_v54 = vadd.f32 %v590_v53, %v589_v52 }
 0x14a   :  { %592 = vadd.xlane.f32.xlu0 %v591_v54 }
 0x1bd   :  { %v593_v56 = vpop.xlane.xlu0 %592 }
 0x1be   :  { %v596_v57 = vadd.f32 %v595_v55, %v593_v56 }
 0x1c0   :  { %598 = vst.msk [vmem:[%s1003_s6] sm:$0x3] %vm597_vm4, %v596_v57 }
 0x1c1   :  { %603 = vsyncpa [#allocation3], 1 }
 0x1c2   :  { %604 = vsyncpa [#allocation4], 1 }

</bundles_post_ra>
